<compile_context>
chip_gen: v7x
topology: tpu7x:2x2x1
jax: 0.10.0
libtpu: 0.0.40
codegen_flags: <defaults>
</compile_context>

<pallas_src>
import functools

import jax
import jax.numpy as jnp
from jax.experimental import pallas as pl
from jax.experimental.pallas import tpu as pltpu


def caption_kernel(img_ref,    # (Bp, C*HW) flattened NCHW image (compute dtype)
                   txt_ref,    # (Bp, E)    pre-pooled text features (compute dtype)
                   wi_ref,     # (C*HW, F)  pool-folded image embed weight (wi/HW replicated)
                   wt_ref,     # (E, F)     text embed weight
                   w1_ref,     # (F, F)     linear_1 weight
                   b1_ref,     # (1, F)     f32; linear_1 bias with embed biases folded in
                   w2_ref,     # (F, TN)    current vocab tile of linear_2 weight
                   b2_ref,     # (1, TN)    f32; current vocab tile of linear_2 bias
                   out_ref,    # (Bp, TN)   f32 output tile
                   h_ref):     # scratch (Bp, F), compute dtype: relu(linear_1(embed))
    # Hidden activations are computed once (first vocab tile) and reused while
    # w2 is streamed tile-by-tile through VMEM.
    @pl.when(pl.program_id(0) == 0)
    def _():
        # operation == 'add': image_embed + text_embed.  The spatial mean-pool
        # is folded into wi at trace time, so both embeds are plain MXU pushes
        # into one f32 accumulator -- no XLU reduce, no lane concat.
        embed = jnp.dot(img_ref[...], wi_ref[...],
                        preferred_element_type=jnp.float32)          # (Bp, F)
        embed = embed + jnp.dot(txt_ref[...], wt_ref[...],
                                preferred_element_type=jnp.float32)  # (Bp, F)
        # linear_1 + ReLU (embed biases were folded into b1 at trace time).
        h = jnp.dot(embed.astype(w1_ref.dtype), w1_ref[...],
                    preferred_element_type=jnp.float32) + b1_ref[...]
        h_ref[...] = jnp.maximum(h, 0.0).astype(h_ref.dtype)

    # linear_2 on the current vocab tile.
    out_ref[...] = jnp.dot(h_ref[...], w2_ref[...],
                           preferred_element_type=jnp.float32) + b2_ref[...]


def image_caption_net_forward(image_nchw, sequence_ids, params, *,
                              compute_dtype=jnp.float32, tn=512):
    """image_nchw: (B, C, H, W) float32; sequence_ids: (B, S) int32."""
    B, C, H, W = image_nchw.shape
    HW = H * W
    E = params["emb_table"].shape[1]
    F = params["w1"].shape[0]
    V = params["w2"].shape[1]

    # ---- XLA glue (cheap, fused by XLA) ------------------------------------
    # Free reshape: NCHW memory order flattened so spatial*channel sits on the
    # lane axis; the mean-pool is folded into wi_exp below, so the kernel never
    # does a cross-lane reduce.
    img = image_nchw.reshape(B, C * HW)
    # Embedding gather + mean over sequence stay in XLA (the mean fuses into
    # the gather); the kernel only sees the (B, E) pooled text features.
    txt = jnp.mean(jnp.take(params["emb_table"], sequence_ids, axis=0), axis=1)

    # Pad batch to a multiple of 8 (>=8) so the output store is an unmasked vst
    # and the MXU gets full sublane rows.  (At B=2 this call is fixed-overhead
    # bound; for throughput, batch more examples per call.)
    Bp = max(8, ((B + 7) // 8) * 8)
    if Bp != B:
        img = jnp.pad(img, ((0, Bp - B), (0, 0)))
        txt = jnp.pad(txt, ((0, Bp - B), (0, 0)))

    # Trace-time exact refactors of the 'add' branch:
    #   * mean-pool folded into wi:  pooled_img @ wi == img_flat @ repeat(wi/HW, HW)
    #     (note: trades a (C, F) weight for a (C*HW, F) weight -- fine at these
    #      spatial sizes; revisit if C*HW gets very large)
    #   * embed biases folded into linear_1's bias:  b1' = b1 + (bi + bt) @ w1
    wi_exp = jnp.repeat(params["wi"] / HW, HW, axis=0)                        # (C*HW, F)
    b1_fused = params["b1"] + (params["bi"] + params["bt"]) @ params["w1"]    # (1, F)

    # Vocab tiling: stream w2/b2/out in lane-dense tiles of TN (multiple of 128)
    # so the kernel scales to 32k+ vocab (w2 cannot live whole in VMEM then).
    TN = min(tn, max(128, ((V + 127) // 128) * 128))
    Vp = ((V + TN - 1) // TN) * TN
    w2, b2 = params["w2"], params["b2"]
    if Vp != V:
        w2 = jnp.pad(w2, ((0, 0), (0, Vp - V)))
        b2 = jnp.pad(b2, ((0, 0), (0, Vp - V)))
    n_tiles = Vp // TN

    # Cast matmul operands to the compute dtype (bf16 on v6e/v7x for MXU-native
    # throughput and half the w2 DMA bytes); biases + accumulation stay f32.
    img = img.astype(compute_dtype)
    txt = txt.astype(compute_dtype)
    wi_exp = wi_exp.astype(compute_dtype)
    wt = params["wt"].astype(compute_dtype)
    w1 = params["w1"].astype(compute_dtype)
    w2 = w2.astype(compute_dtype)
    b1_fused = b1_fused.astype(jnp.float32)
    b2 = b2.astype(jnp.float32)

    itemsize = jnp.dtype(compute_dtype).itemsize
    cost = pl.CostEstimate(
        flops=2 * Bp * (C * HW * F + E * F + F * F + F * Vp),
        transcendentals=0,
        bytes_accessed=(img.size + txt.size + wi_exp.size + wt.size
                        + w1.size + w2.size) * itemsize
                       + (b1_fused.size + b2.size + Bp * Vp) * 4)

    out = pl.pallas_call(
        caption_kernel,
        out_shape=jax.ShapeDtypeStruct((Bp, Vp), jnp.float32),
        grid_spec=pltpu.PrefetchScalarGridSpec(
            num_scalar_prefetch=0,
            grid=(n_tiles,),
            in_specs=[
                pl.BlockSpec((Bp, C * HW), lambda j: (0, 0)),   # img (reused every tile)
                pl.BlockSpec((Bp, E), lambda j: (0, 0)),        # txt
                pl.BlockSpec((C * HW, F), lambda j: (0, 0)),    # wi_exp
                pl.BlockSpec((E, F), lambda j: (0, 0)),         # wt
                pl.BlockSpec((F, F), lambda j: (0, 0)),         # w1
                pl.BlockSpec((1, F), lambda j: (0, 0)),         # b1 (fused)
                pl.BlockSpec((F, TN), lambda j: (0, j)),        # w2 vocab tile (streamed)
                pl.BlockSpec((1, TN), lambda j: (0, j)),        # b2 vocab tile
            ],
            out_specs=pl.BlockSpec((Bp, TN), lambda j: (0, j)),
            scratch_shapes=[pltpu.VMEM((Bp, F), compute_dtype)],
        ),
        # 'arbitrary': h scratch initialized at j==0, reused by later vocab tiles.
        compiler_params=pltpu.CompilerParams(dimension_semantics=("arbitrary",)),
        cost_estimate=cost,
    )(img, txt, wi_exp, wt, w1, b1_fused, w2, b2)
    return out[:B, :V]


def init_params(key, *, channels, embed_dim, features, vocab_size):
    # Deterministic synthetic parameters. Linear weights are stored as (in, out),
    # i.e. the transpose of PyTorch's nn.Linear.weight, so y = x @ W + b.
    ks = jax.random.split(key, 9)
    s = 0.02
    return {
        "emb_table": jax.random.normal(ks[0], (vocab_size, embed_dim), jnp.float32) * s,
        "wi": jax.random.normal(ks[1], (channels, features), jnp.float32) * s,
        "bi": jax.random.normal(ks[2], (1, features), jnp.float32) * s,
        "wt": jax.random.normal(ks[3], (embed_dim, features), jnp.float32) * s,
        "bt": jax.random.normal(ks[4], (1, features), jnp.float32) * s,
        "w1": jax.random.normal(ks[5], (features, features), jnp.float32) * s,
        "b1": jax.random.normal(ks[6], (1, features), jnp.float32) * s,
        "w2": jax.random.normal(ks[7], (features, vocab_size), jnp.float32) * s,
        "b2": jax.random.normal(ks[8], (1, vocab_size), jnp.float32) * s,
    }


if __name__ == "__main__":
    B, C, H, W = 2, 4, 16, 16     # image: (batch, c, w, h) per the module docstring
    S = 8                          # max_length (sequence length)
    E = 32                         # text embedding dim
    FEAT = 32                      # features
    VOCAB = 128                    # vocab_size

    key = jax.random.PRNGKey(0)
    k_img, k_seq, k_par = jax.random.split(key, 3)

    image = jax.random.normal(k_img, (B, C, H, W), jnp.float32)
    sequence = jax.random.randint(k_seq, (B, S), 0, VOCAB, dtype=jnp.int32)
    params = init_params(k_par, channels=C, embed_dim=E, features=FEAT, vocab_size=VOCAB)

    # Pure-JAX reference in the ORIGINAL (unfused) op order.
    pooled = jnp.mean(image.reshape(B, C, H * W), axis=-1)                      # (B, C)
    img_e = pooled @ params["wi"] + params["bi"]
    txt_e = jnp.mean(jnp.take(params["emb_table"], sequence, axis=0), axis=1) @ params["wt"] + params["bt"]
    ref = jnp.maximum((img_e + txt_e) @ params["w1"] + params["b1"], 0.0) @ params["w2"] + params["b2"]

    # f32 compute path (exact-tolerance check).
    fwd_f32 = jax.jit(functools.partial(image_caption_net_forward, compute_dtype=jnp.float32))
    out = jax.block_until_ready(fwd_f32(image, sequence, params))
    assert out.shape == (B, VOCAB) and out.dtype == jnp.float32
    assert jnp.allclose(out, ref, atol=1e-5, rtol=1e-5)

    # bf16 matmul-operand path (v6e/v7x MXU-native); tolerance loosened to bf16 precision.
    fwd_bf16 = jax.jit(functools.partial(image_caption_net_forward, compute_dtype=jnp.bfloat16))
    out_bf16 = jax.block_until_ready(fwd_bf16(image, sequence, params))
    assert out_bf16.shape == (B, VOCAB) and out_bf16.dtype == jnp.float32
    assert jnp.allclose(out_bf16, ref, atol=5e-3, rtol=5e-2)

    # TODO(synk): the original module's prepare() loads vocab pickles from disk and the
    # concat/cross_attention/self_attention fusion branches depend on an unspecified
    # Attention module; only the default operation='add' forward path is implemented.
    print("KERNEL_OK")
</pallas_src>

<mosaic_0001>
module attributes {stable_mosaic.version = 11 : i64} {
  func.func @caption_kernel(%arg0: i32, %arg1: memref<8x1024xf32, #tpu.memory_space<vmem>>, %arg2: memref<8x32xf32, #tpu.memory_space<vmem>>, %arg3: memref<1024x32xf32, #tpu.memory_space<vmem>>, %arg4: memref<32x32xf32, #tpu.memory_space<vmem>>, %arg5: memref<32x32xf32, #tpu.memory_space<vmem>>, %arg6: memref<1x32xf32, #tpu.memory_space<vmem>>, %arg7: memref<32x128xf32, #tpu.memory_space<vmem>>, %arg8: memref<1x128xf32, #tpu.memory_space<vmem>>, %arg9: memref<8x128xf32, #tpu.memory_space<vmem>>, %arg10: memref<8x32xf32, #tpu.memory_space<vmem>>) attributes {dimension_semantics = [#tpu.dimension_semantics<arbitrary>], iteration_bounds = array<i64: 1>, scalar_prefetch = 0 : i64, scratch_operands = 1 : i64, tpu.core_type = #tpu.core_type<tc>, window_params = [{pipeline_mode = #tpu.pipeline_mode<synchronous>, transform_indices = @transform_0, window_bounds = array<i64: 8, 1024>}, {pipeline_mode = #tpu.pipeline_mode<synchronous>, transform_indices = @transform_1, window_bounds = array<i64: 8, 32>}, {pipeline_mode = #tpu.pipeline_mode<synchronous>, transform_indices = @transform_2, window_bounds = array<i64: 1024, 32>}, {pipeline_mode = #tpu.pipeline_mode<synchronous>, transform_indices = @transform_3, window_bounds = array<i64: 32, 32>}, {pipeline_mode = #tpu.pipeline_mode<synchronous>, transform_indices = @transform_4, window_bounds = array<i64: 32, 32>}, {pipeline_mode = #tpu.pipeline_mode<synchronous>, transform_indices = @transform_5, window_bounds = array<i64: 1, 32>}, {transform_indices = @transform_6, window_bounds = array<i64: 32, 128>}, {transform_indices = @transform_7, window_bounds = array<i64: 1, 128>}, {transform_indices = @transform_8, window_bounds = array<i64: 8, 128>}]} {
    %c0_i32 = arith.constant 0 : i32
    %0 = arith.cmpi eq, %arg0, %c0_i32 : i32
    %1 = arith.extui %0 : i1 to i32
    %c0_i32_0 = arith.constant 0 : i32
    %2 = arith.cmpi ne, %1, %c0_i32_0 : i32
    scf.if %2 {
      %c0_8 = arith.constant 0 : index
      %c0_9 = arith.constant 0 : index
      %10 = vector.load %arg1[%c0_8, %c0_9] : memref<8x1024xf32, #tpu.memory_space<vmem>>, vector<8x1024xf32>
      %c0_10 = arith.constant 0 : index
      %c0_11 = arith.constant 0 : index
      %11 = vector.load %arg3[%c0_10, %c0_11] : memref<1024x32xf32, #tpu.memory_space<vmem>>, vector<1024x32xf32>
      %cst_12 = arith.constant dense<0.000000e+00> : vector<8x32xf32>
      %12 = tpu.matmul %10, %11, %cst_12 {dimension_numbers = #tpu.dot_dimension_numbers<[1], [0], [0], [1], [0, 0, 1, 1], [], []>} : vector<8x1024xf32>, vector<1024x32xf32>, vector<8x32xf32> -> vector<8x32xf32>
      %c0_13 = arith.constant 0 : index
      %c0_14 = arith.constant 0 : index
      %13 = vector.load %arg2[%c0_13, %c0_14] : memref<8x32xf32, #tpu.memory_space<vmem>>, vector<8x32xf32>
      %c0_15 = arith.constant 0 : index
      %c0_16 = arith.constant 0 : index
      %14 = vector.load %arg4[%c0_15, %c0_16] : memref<32x32xf32, #tpu.memory_space<vmem>>, vector<32x32xf32>
      %cst_17 = arith.constant dense<0.000000e+00> : vector<8x32xf32>
      %15 = tpu.matmul %13, %14, %cst_17 {dimension_numbers = #tpu.dot_dimension_numbers<[1], [0], [0], [1], [0, 0, 1, 1], [], []>} : vector<8x32xf32>, vector<32x32xf32>, vector<8x32xf32> -> vector<8x32xf32>
      %16 = arith.addf %12, %15 : vector<8x32xf32>
      %c0_18 = arith.constant 0 : index
      %c0_19 = arith.constant 0 : index
      %17 = vector.load %arg5[%c0_18, %c0_19] : memref<32x32xf32, #tpu.memory_space<vmem>>, vector<32x32xf32>
      %cst_20 = arith.constant dense<0.000000e+00> : vector<8x32xf32>
      %18 = tpu.matmul %16, %17, %cst_20 {dimension_numbers = #tpu.dot_dimension_numbers<[1], [0], [0], [1], [0, 0, 1, 1], [], []>} : vector<8x32xf32>, vector<32x32xf32>, vector<8x32xf32> -> vector<8x32xf32>
      %c0_21 = arith.constant 0 : index
      %c0_22 = arith.constant 0 : index
      %19 = vector.load %arg6[%c0_21, %c0_22] : memref<1x32xf32, #tpu.memory_space<vmem>>, vector<1x32xf32>
      %20 = vector.broadcast %19 : vector<1x32xf32> to vector<8x32xf32>
      %21 = arith.addf %18, %20 : vector<8x32xf32>
      %cst_23 = arith.constant 0.000000e+00 : f32
      %22 = vector.broadcast %cst_23 : f32 to vector<8x32xf32>
      %23 = arith.maximumf %21, %22 : vector<8x32xf32>
      %c0_24 = arith.constant 0 : index
      %c0_25 = arith.constant 0 : index
      %24 = vector.load %arg10[%c0_24, %c0_25] : memref<8x32xf32, #tpu.memory_space<vmem>>, vector<8x32xf32>
      tpu.vector_store %arg10[%c0_24, %c0_25], %23 {strides = array<i32>} : memref<8x32xf32, #tpu.memory_space<vmem>>, vector<8x32xf32>,
    } else {
    }
    %c0 = arith.constant 0 : index
    %c0_1 = arith.constant 0 : index
    %3 = vector.load %arg10[%c0, %c0_1] : memref<8x32xf32, #tpu.memory_space<vmem>>, vector<8x32xf32>
    %c0_2 = arith.constant 0 : index
    %c0_3 = arith.constant 0 : index
    %4 = vector.load %arg7[%c0_2, %c0_3] : memref<32x128xf32, #tpu.memory_space<vmem>>, vector<32x128xf32>
    %cst = arith.constant dense<0.000000e+00> : vector<8x128xf32>
    %5 = tpu.matmul %3, %4, %cst {dimension_numbers = #tpu.dot_dimension_numbers<[1], [0], [0], [1], [0, 0, 1, 1], [], []>} : vector<8x32xf32>, vector<32x128xf32>, vector<8x128xf32> -> vector<8x128xf32>
    %c0_4 = arith.constant 0 : index
    %c0_5 = arith.constant 0 : index
    %6 = vector.load %arg8[%c0_4, %c0_5] : memref<1x128xf32, #tpu.memory_space<vmem>>, vector<1x128xf32>
    %7 = vector.broadcast %6 : vector<1x128xf32> to vector<8x128xf32>
    %8 = arith.addf %5, %7 : vector<8x128xf32>
    %c0_6 = arith.constant 0 : index
    %c0_7 = arith.constant 0 : index
    %9 = vector.load %arg9[%c0_6, %c0_7] : memref<8x128xf32, #tpu.memory_space<vmem>>, vector<8x128xf32>
    tpu.vector_store %arg9[%c0_6, %c0_7], %8 {strides = array<i32>} : memref<8x128xf32, #tpu.memory_space<vmem>>, vector<8x128xf32>,
    return
  }
  func.func @transform_0(%arg0: i32) -> (i32, i32) {
    %c0_i32 = arith.constant 0 : i32
    %c0_i32_0 = arith.constant 0 : i32
    %c0_i32_1 = arith.constant 0 : i32
    return %c0_i32, %c0_i32_0 : i32, i32
  }
  func.func @transform_1(%arg0: i32) -> (i32, i32) {
    %c0_i32 = arith.constant 0 : i32
    %c0_i32_0 = arith.constant 0 : i32
    %c0_i32_1 = arith.constant 0 : i32
    return %c0_i32, %c0_i32_0 : i32, i32
  }
  func.func @transform_2(%arg0: i32) -> (i32, i32) {
    %c0_i32 = arith.constant 0 : i32
    %c0_i32_0 = arith.constant 0 : i32
    %c0_i32_1 = arith.constant 0 : i32
    return %c0_i32, %c0_i32_0 : i32, i32
  }
  func.func @transform_3(%arg0: i32) -> (i32, i32) {
    %c0_i32 = arith.constant 0 : i32
    %c0_i32_0 = arith.constant 0 : i32
    %c0_i32_1 = arith.constant 0 : i32
    return %c0_i32, %c0_i32_0 : i32, i32
  }
  func.func @transform_4(%arg0: i32) -> (i32, i32) {
    %c0_i32 = arith.constant 0 : i32
    %c0_i32_0 = arith.constant 0 : i32
    %c0_i32_1 = arith.constant 0 : i32
    return %c0_i32, %c0_i32_0 : i32, i32
  }
  func.func @transform_5(%arg0: i32) -> (i32, i32) {
    %c0_i32 = arith.constant 0 : i32
    %c0_i32_0 = arith.constant 0 : i32
    %c0_i32_1 = arith.constant 0 : i32
    return %c0_i32, %c0_i32_0 : i32, i32
  }
  func.func @transform_6(%arg0: i32) -> (i32, i32) {
    %c0_i32 = arith.constant 0 : i32
    %c0_i32_0 = arith.constant 0 : i32
    return %c0_i32, %arg0 : i32, i32
  }
  func.func @transform_7(%arg0: i32) -> (i32, i32) {
    %c0_i32 = arith.constant 0 : i32
    %c0_i32_0 = arith.constant 0 : i32
    return %c0_i32, %arg0 : i32, i32
  }
  func.func @transform_8(%arg0: i32) -> (i32, i32) {
    %c0_i32 = arith.constant 0 : i32
    %c0_i32_0 = arith.constant 0 : i32
    return %c0_i32, %arg0 : i32, i32
  }
}

</mosaic_0001>

<bundles_post_ra>
// kernel: image_caption_net_forward.1
= control target key start
LH: loop header
LB: loop body
LE: loop exit
PB: predicated region body
PF: predicated region fallthrough
CT: control target
= control target key end

     0   :  { %v1047_v0 = vmov 0.0|0.0   ;;  %vm1048_vm0 = vmmov 0   ;;  %v1049_v4 = vmov 0.0   ;;  %vm174_vm1 = vcmask 261120   ;;  %s1567_s3 = inlined_call_operand.vmem [shape: f32[32,32], index: 3, kind: input, shape index: {}]   ;;  %s1568_s2 = inlined_call_operand.vmem [shape: f32[1024,32], index: 2, kind: input, shape index: {}]   ;;  %s1569_s1 = inlined_call_operand.vmem [shape: f32[8,32], index: 1, kind: input, shape index: {}]   ;;  %s1570_s0 = inlined_call_operand.vmem [shape: f32[8,1024], index: 0, kind: input, shape index: {}]   ;;  %s1571_s4 = inlined_call_operand.vmem [shape: f32[32,32], index: 4, kind: input, shape index: {}]   ;;  %s1572_s6 = inlined_call_operand.vmem [shape: f32[32,128], index: 6, kind: input, shape index: {}]   ;;  %s1573_s5 = inlined_call_operand.vmem [shape: f32[1,32], index: 5, kind: input, shape index: {}]   ;;  %s1574_s7 = inlined_call_operand.vmem [shape: f32[1,128], index: 7, kind: input, shape index: {}]   ;;  %s1575_s8 = inlined_call_operand.vmem [shape: f32[8,128], index: 8, kind: output, shape index: {}]  }
   0x1   :  { %898 = vmatprep.subr.bf16.mxu0 %v1047_v0  ;;  %v170_v1 = vld [vmem:[%s1567_s3] sm:$0xff]  ;;  %v171_v2 = vld [vmem:[%s1567_s3 + $0x8] sm:$0xff]  ;;  %873 = vmatprep.mubr.msk.f32.mxu0 %vm1048_vm0, %v1049_v4  ;;  %v172_v11 = vld [vmem:[%s1567_s3 + $0x10] sm:$0xff] }
   0x2   :  { %v57_v3 = vld [vmem:[%s1568_s2 + $0x80] sm:$0xff]  ;;  %v899_v5 = vpack.c.bf16 %v171_v2, %v170_v1  ;;  %v58_v6 = vld [vmem:[%s1568_s2 + $0x88] sm:$0xff]  ;;  %v173_v12 = vld [vmem:[%s1567_s3 + $0x18] sm:$0xff] }
   0x3   :  { %v41_v7 = vld [vmem:[%s1568_s2] sm:$0xff]  ;;  %v42_v8 = vld [vmem:[%s1568_s2 + $0x8] sm:$0xff]  ;;  %v904_v9 = vpack.c.bf16 %v58_v6, %v57_v3  ;;  %v59_v13 = vld [vmem:[%s1568_s2 + $0x90] sm:$0xff]  ;;  %v902_v14 = vpack.c.bf16 %v173_v12, %v172_v11 }
   0x4   :  { %v906_v10 = vpack.c.bf16 %v42_v8, %v41_v7  ;;  %900 = vmatpush3.bf16.msra.mxu0 %v899_v5  ;;  %v60_v15 = vld [vmem:[%s1568_s2 + $0x98] sm:$0xff]  ;;  %v43_v16 = vld [vmem:[%s1568_s2 + $0x10] sm:$0xff]  ;;  %v89_v19 = vld [vmem:[%s1568_s2 + $0x180] sm:$0xff] }
   0x5   :  { %v44_v17 = vld [vmem:[%s1568_s2 + $0x18] sm:$0xff]  ;;  %905 = vmatprep.subr.bf16.mxu1 %v904_v9  ;;  %901 = vmatprep.subr.bf16.mxu0 %v1047_v0  ;;  %v908_v18 = vpack.c.bf16 %v60_v15, %v59_v13  ;;  %v90_v20 = vld [vmem:[%s1568_s2 + $0x188] sm:$0xff]  ;;  %v169_v22 = vld [vmem:[%s1569_s1] sm:$0xff] }
   0x6   :  { %907 = vmatpush3.bf16.msra.mxu1 %v906_v10  ;;  %v910_v21 = vpack.c.bf16 %v44_v17, %v43_v16  ;;  %v936_v23 = vpack.c.bf16 %v90_v20, %v89_v19  ;;  %v61_v24 = vld [vmem:[%s1568_s2 + $0xa0] sm:$0xff]  ;;  %v62_v25 = vld [vmem:[%s1568_s2 + $0xa8] sm:$0xff]  ;;  %v91_v32 = vld [vmem:[%s1568_s2 + $0x190] sm:$0xff] }
   0x7   :  { %v73_v26 = vld [vmem:[%s1568_s2 + $0x100] sm:$0xff]  ;;  %909 = vmatprep.subr.bf16.mxu1 %v908_v18  ;;  %v912_v27 = vpack.c.bf16 %v62_v25, %v61_v24  ;;  %v74_v28 = vld [vmem:[%s1568_s2 + $0x108] sm:$0xff]  ;;  %v92_v33 = vld [vmem:[%s1568_s2 + $0x198] sm:$0xff] }
   0x8   :  { %v45_v29 = vld [vmem:[%s1568_s2 + $0x20] sm:$0xff]  ;;  %v46_v30 = vld [vmem:[%s1568_s2 + $0x28] sm:$0xff]  ;;  %903 = vmatpush3.bf16.msra.mxu0 %v902_v14  ;;  %v938_v31 = vpack.c.bf16 %v74_v28, %v73_v26  ;;  %v63_v34 = vld [vmem:[%s1568_s2 + $0xb0] sm:$0xff]  ;;  %v940_v35 = vpack.c.bf16 %v92_v33, %v91_v32 }
   0x9   :  { %937 = vmatprep.subr.bf16.mxu0 %v936_v23  ;;  %v64_v36 = vld [vmem:[%s1568_s2 + $0xb8] sm:$0xff]  ;;  %v75_v37 = vld [vmem:[%s1568_s2 + $0x110] sm:$0xff]  ;;  %v914_v39 = vpack.c.bf16 %v46_v30, %v45_v29  ;;  %v93_v40 = vld [vmem:[%s1568_s2 + $0x1a0] sm:$0xff] }
   0xa   :  { %v76_v38 = vld [vmem:[%s1568_s2 + $0x118] sm:$0xff]  ;;  %911 = vmatpush3.bf16.msra.mxu1 %v910_v21  ;;  %v916_v41 = vpack.c.bf16 %v64_v36, %v63_v34  ;;  %v47_v42 = vld [vmem:[%s1568_s2 + $0x30] sm:$0xff]  ;;  %v94_v44 = vld [vmem:[%s1568_s2 + $0x1a8] sm:$0xff] }
   0xb   :  { %874 = vmatmul.mubr.msk.f32.vlgmr.msra.gmra.mrb[0].mxu0 %vm174_vm1, %v169_v22  ;;  %913 = vmatprep.subr.bf16.mxu1 %v912_v27  ;;  %v48_v43 = vld [vmem:[%s1568_s2 + $0x38] sm:$0xff]  ;;  %v942_v45 = vpack.c.bf16 %v76_v38, %v75_v37  ;;  %v65_v46 = vld [vmem:[%s1568_s2 + $0xc0] sm:$0xff]  ;;  %v66_v47 = vld [vmem:[%s1568_s2 + $0xc8] sm:$0xff]  ;;  %v944_v48 = vpack.c.bf16 %v94_v44, %v93_v40 }
   0xc   :  { %939 = vmatpush3.bf16.msra.mxu0 %v938_v31  ;;  %v77_v49 = vld [vmem:[%s1568_s2 + $0x120] sm:$0xff]  ;;  %v78_v50 = vld [vmem:[%s1568_s2 + $0x128] sm:$0xff]  ;;  %v918_v51 = vpack.c.bf16 %v48_v43, %v47_v42  ;;  %v95_v52 = vld [vmem:[%s1568_s2 + $0x1b0] sm:$0xff]  ;;  %v920_v54 = vpack.c.bf16 %v66_v47, %v65_v46 }
   0xd   :  { %941 = vmatprep.subr.bf16.mxu0 %v940_v35  ;;  %v96_v53 = vld [vmem:[%s1568_s2 + $0x1b8] sm:$0xff]  ;;  %v49_v55 = vld [vmem:[%s1568_s2 + $0x40] sm:$0xff]  ;;  %v50_v56 = vld [vmem:[%s1568_s2 + $0x48] sm:$0xff]  ;;  %v946_v57 = vpack.c.bf16 %v78_v50, %v77_v49 }
   0xe   :  { %915 = vmatpush3.bf16.msra.mxu1 %v914_v39  ;;  %v67_v58 = vld [vmem:[%s1568_s2 + $0xd0] sm:$0xff]  ;;  %v68_v59 = vld [vmem:[%s1568_s2 + $0xd8] sm:$0xff]  ;;  %v948_v60 = vpack.c.bf16 %v96_v53, %v95_v52  ;;  %v922_v63 = vpack.c.bf16 %v50_v56, %v49_v55  ;;  %v97_v1 = vld [vmem:[%s1568_s2 + $0x1c0] sm:$0xff] }
   0xf   :  { %917 = vmatprep.subr.bf16.mxu1 %v916_v41  ;;  %v79_v61 = vld [vmem:[%s1568_s2 + $0x130] sm:$0xff]  ;;  %v80_v62 = vld [vmem:[%s1568_s2 + $0x138] sm:$0xff]  ;;  %v98_v2 = vld [vmem:[%s1568_s2 + $0x1c8] sm:$0xff]  ;;  %v924_v3 = vpack.c.bf16 %v68_v59, %v67_v58 }
  0x10   :  { %943 = vmatpush3.bf16.msra.mxu0 %v942_v45  ;;  %v51_v5 = vld [vmem:[%s1568_s2 + $0x50] sm:$0xff]  ;;  %v52_v6 = vld [vmem:[%s1568_s2 + $0x58] sm:$0xff]  ;;  %v950_v7 = vpack.c.bf16 %v80_v62, %v79_v61  ;;  %v69_v8 = vld [vmem:[%s1568_s2 + $0xe0] sm:$0xff]  ;;  %v952_v10 = vpack.c.bf16 %v98_v2, %v97_v1 }
  0x11   :  { %945 = vmatprep.subr.bf16.mxu0 %v944_v48  ;;  %v70_v9 = vld [vmem:[%s1568_s2 + $0xe8] sm:$0xff]  ;;  %v81_v11 = vld [vmem:[%s1568_s2 + $0x140] sm:$0xff]  ;;  %v926_v14 = vpack.c.bf16 %v52_v6, %v51_v5  ;;  %v99_v15 = vld [vmem:[%s1568_s2 + $0x1d0] sm:$0xff] }
  0x12   :  { %919 = vmatpush3.bf16.msra.mxu1 %v918_v51  ;;  %v82_v12 = vld [vmem:[%s1568_s2 + $0x148] sm:$0xff]  ;;  %v100_v16 = vld [vmem:[%s1568_s2 + $0x1d8] sm:$0xff]  ;;  %v928_v17 = vpack.c.bf16 %v70_v9, %v69_v8  ;;  %v53_v18 = vld [vmem:[%s1568_s2 + $0x60] sm:$0xff] }
  0x13   :  { %921 = vmatprep.subr.bf16.mxu1 %v920_v54  ;;  %v34_v13 = vld [vmem:[%s1570_s0 + $0x8] sm:$0xff]  ;;  %v954_v20 = vpack.c.bf16 %v82_v12, %v81_v11  ;;  %v71_v21 = vld [vmem:[%s1568_s2 + $0xf0] sm:$0xff]  ;;  %v72_v22 = vld [vmem:[%s1568_s2 + $0xf8] sm:$0xff]  ;;  %v956_v23 = vpack.c.bf16 %v100_v16, %v99_v15 }
  0x14   :  { %947 = vmatpush3.bf16.msra.mxu0 %v946_v57  ;;  %312 = vmatprep.mubr.f32.mxu1 %v34_v13  ;;  %v54_v19 = vld [vmem:[%s1568_s2 + $0x68] sm:$0xff]  ;;  %v83_v24 = vld [vmem:[%s1568_s2 + $0x150] sm:$0xff]  ;;  %v84_v25 = vld [vmem:[%s1568_s2 + $0x158] sm:$0xff]  ;;  %v932_v29 = vpack.c.bf16 %v72_v22, %v71_v21 }
  0x15   :  { %949 = vmatprep.subr.bf16.mxu0 %v948_v60  ;;  %v930_v26 = vpack.c.bf16 %v54_v19, %v53_v18  ;;  %v101_v27 = vld [vmem:[%s1568_s2 + $0x1e0] sm:$0xff]  ;;  %v102_v28 = vld [vmem:[%s1568_s2 + $0x1e8] sm:$0xff]  ;;  %v55_v30 = vld [vmem:[%s1568_s2 + $0x70] sm:$0xff]  ;;  %v958_v33 = vpack.c.bf16 %v84_v25, %v83_v24 }
  0x16   :  { %923 = vmatpush3.bf16.msra.mxu1 %v922_v63  ;;  %v56_v31 = vld [vmem:[%s1568_s2 + $0x78] sm:$0xff]  ;;  %v121_v34 = vld [vmem:[%s1568_s2 + $0x280] sm:$0xff]  ;;  %v122_v35 = vld [vmem:[%s1568_s2 + $0x288] sm:$0xff]  ;;  %v960_v36 = vpack.c.bf16 %v102_v28, %v101_v27 }
  0x17   :  { %925 = vmatprep.subr.bf16.mxu1 %v924_v3  ;;  %v36_v32 = vld [vmem:[%s1570_s0 + $0x18] sm:$0xff]  ;;  %v85_v37 = vld [vmem:[%s1568_s2 + $0x160] sm:$0xff]  ;;  %v86_v38 = vld [vmem:[%s1568_s2 + $0x168] sm:$0xff]  ;;  %v934_v39 = vpack.c.bf16 %v56_v31, %v55_v30  ;;  %v968_v42 = vpack.c.bf16 %v122_v35, %v121_v34 }
  0x18   :  { %951 = vmatpush3.bf16.msra.mxu0 %v950_v7  ;;  %382 = vmatprep.mubr.f32.mxu0 %v36_v32  ;;  %v103_v40 = vld [vmem:[%s1568_s2 + $0x1f0] sm:$0xff]  ;;  %v104_v41 = vld [vmem:[%s1568_s2 + $0x1f8] sm:$0xff]  ;;  %v105_v43 = vld [vmem:[%s1568_s2 + $0x200] sm:$0xff]  ;;  %v962_v45 = vpack.c.bf16 %v86_v38, %v85_v37 }
  0x19   :  { %953 = vmatprep.subr.bf16.mxu0 %v952_v10  ;;  %v106_v44 = vld [vmem:[%s1568_s2 + $0x208] sm:$0xff]  ;;  %v123_v46 = vld [vmem:[%s1568_s2 + $0x290] sm:$0xff]  ;;  %v124_v47 = vld [vmem:[%s1568_s2 + $0x298] sm:$0xff]  ;;  %v964_v48 = vpack.c.bf16 %v104_v41, %v103_v40 }
  0x1a   :  { %927 = vmatpush3.bf16.msra.mxu1 %v926_v14  ;;  %v87_v49 = vld [vmem:[%s1568_s2 + $0x170] sm:$0xff]  ;;  %v88_v50 = vld [vmem:[%s1568_s2 + $0x178] sm:$0xff]  ;;  %v33_v51 = vld [vmem:[%s1570_s0] sm:$0xff]  ;;  %v970_v52 = vpack.c.bf16 %v106_v44, %v105_v43  ;;  %v972_v55 = vpack.c.bf16 %v124_v47, %v123_v46 }
  0x1b   :  { %929 = vmatprep.subr.bf16.mxu1 %v928_v17  ;;  %v153_v53 = vld [vmem:[%s1568_s2 + $0x380] sm:$0xff]  ;;  %v154_v54 = vld [vmem:[%s1568_s2 + $0x388] sm:$0xff]  ;;  %v107_v56 = vld [vmem:[%s1568_s2 + $0x210] sm:$0xff]  ;;  %v966_v58 = vpack.c.bf16 %v88_v50, %v87_v49 }
  0x1c   :  { %955 = vmatpush3.bf16.msra.mxu0 %v954_v20  ;;  %v108_v57 = vld [vmem:[%s1568_s2 + $0x218] sm:$0xff]  ;;  %v125_v59 = vld [vmem:[%s1568_s2 + $0x2a0] sm:$0xff]  ;;  %v126_v60 = vld [vmem:[%s1568_s2 + $0x2a8] sm:$0xff]  ;;  %v1000_v61 = vpack.c.bf16 %v154_v54, %v153_v53 }
  0x1d   :  { %957 = vmatprep.subr.bf16.mxu0 %v956_v23  ;;  %v137_v62 = vld [vmem:[%s1568_s2 + $0x300] sm:$0xff]  ;;  %v138_v63 = vld [vmem:[%s1568_s2 + $0x308] sm:$0xff]  ;;  %v974_v1 = vpack.c.bf16 %v108_v57, %v107_v56  ;;  %v155_v2 = vld [vmem:[%s1568_s2 + $0x390] sm:$0xff]  ;;  %v976_v5 = vpack.c.bf16 %v126_v60, %v125_v59 }
  0x1e   :  { %931 = vmatpush3.bf16.msra.mxu1 %v930_v26  ;;  %v156_v3 = vld [vmem:[%s1568_s2 + $0x398] sm:$0xff]  ;;  %v109_v6 = vld [vmem:[%s1568_s2 + $0x220] sm:$0xff]  ;;  %v110_v7 = vld [vmem:[%s1568_s2 + $0x228] sm:$0xff]  ;;  %v1002_v9 = vpack.c.bf16 %v138_v63, %v137_v62 }
  0x1f   :  { %933 = vmatprep.subr.bf16.mxu1 %v932_v29  ;;  %v35_v8 = vld [vmem:[%s1570_s0 + $0x10] sm:$0xff]  ;;  %v128_v11 = vld [vmem:[%s1568_s2 + $0x2b8] sm:$0xff]  ;;  %v1004_v12 = vpack.c.bf16 %v156_v3, %v155_v2  ;;  %v978_v15 = vpack.c.bf16 %v110_v7, %v109_v6  ;;  %v157_v16 = vld [vmem:[%s1568_s2 + $0x3a0] sm:$0xff] }
  0x20   :  { %959 = vmatpush3.bf16.msra.mxu0 %v958_v33  ;;  %v127_v10 = vld [vmem:[%s1568_s2 + $0x2b0] sm:$0xff]  ;;  %v140_v14 = vld [vmem:[%s1568_s2 + $0x318] sm:$0xff]  ;;  %v158_v17 = vld [vmem:[%s1568_s2 + $0x3a8] sm:$0xff] }
  0x21   :  { %961 = vmatprep.subr.bf16.mxu0 %v960_v36  ;;  %v139_v13 = vld [vmem:[%s1568_s2 + $0x310] sm:$0xff]  ;;  %v980_v18 = vpack.c.bf16 %v128_v11, %v127_v10  ;;  %v112_v20 = vld [vmem:[%s1568_s2 + $0x238] sm:$0xff]  ;;  %v129_v22 = vld [vmem:[%s1568_s2 + $0x2c0] sm:$0xff]  ;;  %v1008_v25 = vpack.c.bf16 %v158_v17, %v157_v16 }
  0x22   :  { %935 = vmatpush3.bf16.msra.mxu1 %v934_v39  ;;  %v111_v19 = vld [vmem:[%s1568_s2 + $0x230] sm:$0xff]  ;;  %v1006_v21 = vpack.c.bf16 %v140_v14, %v139_v13  ;;  %v130_v23 = vld [vmem:[%s1568_s2 + $0x2c8] sm:$0xff]  ;;  %v141_v26 = vld [vmem:[%s1568_s2 + $0x320] sm:$0xff] }
  0x23   :  { %969 = vmatprep.subr.bf16.mxu1 %v968_v42  ;;  %v38_v24 = vld [vmem:[%s1570_s0 + $0x28] sm:$0xff]  ;;  %v982_v28 = vpack.c.bf16 %v112_v20, %v111_v19  ;;  %v159_v29 = vld [vmem:[%s1568_s2 + $0x3b0] sm:$0xff]  ;;  %v160_v30 = vld [vmem:[%s1568_s2 + $0x3b8] sm:$0xff]  ;;  %v984_v31 = vpack.c.bf16 %v130_v23, %v129_v22 }
  0x24   :  { %963 = vmatpush3.bf16.msra.mxu0 %v962_v45  ;;  %v142_v27 = vld [vmem:[%s1568_s2 + $0x328] sm:$0xff]  ;;  %v113_v32 = vld [vmem:[%s1568_s2 + $0x240] sm:$0xff]  ;;  %v40_v34 = vld [vmem:[%s1570_s0 + $0x38] sm:$0xff]  ;;  %v1012_v38 = vpack.c.bf16 %v160_v30, %v159_v29 }
  0x25   :  { %313 = vmatmul.mubr.f32.vlgmr.msra.gmra.mrb[0].mxu1 %v33_v51  ;;  %965 = vmatprep.subr.bf16.mxu0 %v964_v48  ;;  %v114_v33 = vld [vmem:[%s1568_s2 + $0x248] sm:$0xff]  ;;  %v1010_v35 = vpack.c.bf16 %v142_v27, %v141_v26  ;;  %v131_v36 = vld [vmem:[%s1568_s2 + $0x2d0] sm:$0xff]  ;;  %v132_v37 = vld [vmem:[%s1568_s2 + $0x2d8] sm:$0xff] }
  0x26   :  { %971 = vmatpush3.bf16.msra.mxu1 %v970_v52  ;;  %452 = vmatprep.mubr.f32.mxu1 %v38_v24  ;;  %v143_v39 = vld [vmem:[%s1568_s2 + $0x330] sm:$0xff]  ;;  %v144_v40 = vld [vmem:[%s1568_s2 + $0x338] sm:$0xff]  ;;  %v986_v41 = vpack.c.bf16 %v114_v33, %v113_v32  ;;  %v161_v42 = vld [vmem:[%s1568_s2 + $0x3c0] sm:$0xff]  ;;  %v988_v44 = vpack.c.bf16 %v132_v37, %v131_v36 }
  0x27   :  { %973 = vmatprep.subr.bf16.mxu1 %v972_v55  ;;  %v162_v43 = vld [vmem:[%s1568_s2 + $0x3c8] sm:$0xff]  ;;  %v115_v45 = vld [vmem:[%s1568_s2 + $0x250] sm:$0xff]  ;;  %v116_v46 = vld [vmem:[%s1568_s2 + $0x258] sm:$0xff]  ;;  %v1014_v47 = vpack.c.bf16 %v144_v40, %v143_v39 }
  0x28   :  { %967 = vmatpush3.bf16.msra.mxu0 %v966_v58  ;;  %v133_v48 = vld [vmem:[%s1568_s2 + $0x2e0] sm:$0xff]  ;;  %v134_v49 = vld [vmem:[%s1568_s2 + $0x2e8] sm:$0xff]  ;;  %v1016_v50 = vpack.c.bf16 %v162_v43, %v161_v42  ;;  %v990_v53 = vpack.c.bf16 %v116_v46, %v115_v45  ;;  %v163_v54 = vld [vmem:[%s1568_s2 + $0x3d0] sm:$0xff] }
  0x29   :  { %1001 = vmatprep.subr.bf16.mxu0 %v1000_v61  ;;  %v145_v51 = vld [vmem:[%s1568_s2 + $0x340] sm:$0xff]  ;;  %v146_v52 = vld [vmem:[%s1568_s2 + $0x348] sm:$0xff]  ;;  %v164_v55 = vld [vmem:[%s1568_s2 + $0x3d8] sm:$0xff]  ;;  %v992_v56 = vpack.c.bf16 %v134_v49, %v133_v48 }
  0x2a   :  { %975 = vmatpush3.bf16.msra.mxu1 %v974_v1  ;;  %v117_v57 = vld [vmem:[%s1568_s2 + $0x260] sm:$0xff]  ;;  %v118_v58 = vld [vmem:[%s1568_s2 + $0x268] sm:$0xff]  ;;  %v1018_v59 = vpack.c.bf16 %v146_v52, %v145_v51  ;;  %v135_v60 = vld [vmem:[%s1568_s2 + $0x2f0] sm:$0xff]  ;;  %v1020_v62 = vpack.c.bf16 %v164_v55, %v163_v54 }
  0x2b   :  { %383 = vmatmul.mubr.f32.vlgmr.msra.gmra.mrb[2].mxu0 %v35_v8  ;;  %977 = vmatprep.subr.bf16.mxu1 %v976_v5  ;;  %v136_v61 = vld [vmem:[%s1568_s2 + $0x2f8] sm:$0xff]  ;;  %v147_v63 = vld [vmem:[%s1568_s2 + $0x350] sm:$0xff]  ;;  %v994_v2 = vpack.c.bf16 %v118_v58, %v117_v57  ;;  %v165_v3 = vld [vmem:[%s1568_s2 + $0x3e0] sm:$0xff] }
  0x2c   :  { %1003 = vmatpush3.bf16.msra.mxu0 %v1002_v9  ;;  %522 = vmatprep.mubr.f32.mxu0 %v40_v34  ;;  %v148_v1 = vld [vmem:[%s1568_s2 + $0x358] sm:$0xff]  ;;  %v166_v5 = vld [vmem:[%s1568_s2 + $0x3e8] sm:$0xff]  ;;  %v996_v6 = vpack.c.bf16 %v136_v61, %v135_v60  ;;  %v119_v7 = vld [vmem:[%s1568_s2 + $0x270] sm:$0xff] }
  0x2d   :  { %1005 = vmatprep.subr.bf16.mxu0 %v1004_v12  ;;  %v120_v8 = vld [vmem:[%s1568_s2 + $0x278] sm:$0xff]  ;;  %v1022_v9 = vpack.c.bf16 %v148_v1, %v147_v63  ;;  %v1024_v10 = vpack.c.bf16 %v166_v5, %v165_v3  ;;  %v149_v11 = vld [vmem:[%s1568_s2 + $0x360] sm:$0xff]  ;;  %v150_v12 = vld [vmem:[%s1568_s2 + $0x368] sm:$0xff] }
  0x2e   :  { %979 = vmatpush3.bf16.msra.mxu1 %v978_v15  ;;  %v998_v13 = vpack.c.bf16 %v120_v8, %v119_v7  ;;  %v167_v14 = vld [vmem:[%s1568_s2 + $0x3f0] sm:$0xff]  ;;  %v168_v15 = vld [vmem:[%s1568_s2 + $0x3f8] sm:$0xff]  ;;  %v1026_v16 = vpack.c.bf16 %v150_v12, %v149_v11  ;;  %v37_v20 = vld [vmem:[%s1570_s0 + $0x20] sm:$0xff] }
  0x2f   :  { %981 = vmatprep.subr.bf16.mxu1 %v980_v18  ;;  %v1028_v17 = vpack.c.bf16 %v168_v15, %v167_v14  ;;  %v151_v18 = vld [vmem:[%s1568_s2 + $0x370] sm:$0xff]  ;;  %v152_v19 = vld [vmem:[%s1568_s2 + $0x378] sm:$0xff]  ;;  %v528_v23 = vld [vmem:[%s1571_s4] sm:$0xff] }
  0x30   :  { %1007 = vmatpush3.bf16.msra.mxu0 %v1006_v21  ;;  %v1030_v21 = vpack.c.bf16 %v152_v19, %v151_v18  ;;  %v39_v22 = vld [vmem:[%s1570_s0 + $0x30] sm:$0xff]  ;;  %v529_v24 = vld [vmem:[%s1571_s4 + $0x8] sm:$0xff]  ;;  %v615_v46 = vld [vmem:[%s1572_s6] sm:$0xff] }
  0x31   :  { %1009 = vmatprep.subr.bf16.mxu0 %v1008_v25  ;;  %v1033_v25 = vpack.c.bf16 %v529_v24, %v528_v23  ;;  %v530_v26 = vld [vmem:[%s1571_s4 + $0x10] sm:$0xff]  ;;  %v706_v52 = vld [vmem:[%s1573_s5] ss:$0 sm:$0xff] }
  0x32   :  { %983 = vmatpush3.bf16.msra.mxu1 %v982_v28  ;;  %v617_v49 = vld [vmem:[%s1572_s6 + $0x10] sm:$0xff]  ;;  %v708_v58 = vld [vmem:[%s1574_s7] ss:$0 sm:$0xff] }
  0x33   :  { %985 = vmatprep.subr.bf16.mxu1 %v984_v31 }
  0x34   :  { %1011 = vmatpush3.bf16.msra.mxu0 %v1010_v35 }
  0x35   :  { %1013 = vmatprep.subr.bf16.mxu0 %v1012_v38 }
  0x36   :  { %987 = vmatpush3.bf16.msra.mxu1 %v986_v41 }
  0x37   :  { %989 = vmatprep.subr.bf16.mxu1 %v988_v44 }
  0x38   :  { %1015 = vmatpush3.bf16.msra.mxu0 %v1014_v47  ;;  %v616_v47 = vld [vmem:[%s1572_s6 + $0x8] sm:$0xff] }
  0x39   :  { %1017 = vmatprep.subr.bf16.mxu0 %v1016_v50  ;;  %v1039_v48 = vpack.c.bf16 %v616_v47, %v615_v46  ;;  %v618_v50 = vld [vmem:[%s1572_s6 + $0x18] sm:$0xff] }
  0x3a   :  { %991 = vmatpush3.bf16.msra.mxu1 %v990_v53  ;;  %v1042_v51 = vpack.c.bf16 %v618_v50, %v617_v49 }
  0x3b   :  { %993 = vmatprep.subr.bf16.mxu1 %v992_v56 }
  0x3c   :  { %1019 = vmatpush3.bf16.msra.mxu0 %v1018_v59 }
  0x3d   :  { %1021 = vmatprep.subr.bf16.mxu0 %v1020_v62 }
  0x3e   :  { %995 = vmatpush3.bf16.msra.mxu1 %v994_v2 }
  0x3f   :  { %997 = vmatprep.subr.bf16.mxu1 %v996_v6 }
  0x40   :  { %1023 = vmatpush3.bf16.msra.mxu0 %v1022_v9 }
  0x41   :  { %1025 = vmatprep.subr.bf16.mxu0 %v1024_v10 }
  0x42   :  { %999 = vmatpush3.bf16.msra.mxu1 %v998_v13 }
  0x43   :  { %1032 = vmatprep.subr.bf16.mxu1 %v1047_v0 }
  0x44   :  { %1027 = vmatpush3.bf16.msra.mxu0 %v1026_v16 }
  0x45   :  { %453 = vmatmul.mubr.f32.vlgmr.msra.gmra.mrb[2].mxu1 %v37_v20  ;;  %1029 = vmatprep.subr.bf16.mxu0 %v1028_v17 }
  0x46   :  { %884 = vmatprep.mubr.msk.f32.mxu1 %vm1048_vm0, %v1049_v4  ;;  %1034 = vmatpush3.bf16.msra.mxu1 %v1033_v25 }
  0x47   :  { %1035 = vmatprep.subr.bf16.mxu1 %v1047_v0 }
  0x48   :  { %1031 = vmatpush3.bf16.msra.mxu0 %v1030_v21 }
  0x49   :  { %1038 = vmatprep.subr.bf16.mxu0 %v1047_v0 }
  0x4b   :  { %523 = vmatmul.mubr.f32.vlgmr.msra.gmra.mrb[4].mxu0 %v39_v22 }
  0x4c   :  { %895 = vmatprep.mubr.msk.f32.mxu0 %vm1048_vm0, %v1049_v4  ;;  %v531_v4 = vld [vmem:[%s1571_s4 + $0x18] sm:$0xff]  ;;  %1040 = vmatpush3.bf16.msra.mxu0 %v1039_v48 }
  0x4d   :  { %v1036_v27 = vpack.c.bf16 %v531_v4, %v530_v26  ;;  %1041 = vmatprep.subr.bf16.mxu0 %v1047_v0 }
  0x4f   :  { %1037 = vmatpush3.bf16.msra.mxu1 %v1036_v27 }
  0x50   :  { %1043 = vmatpush3.bf16.msra.mxu0 %v1042_v51 }
  0xde   :  { %v244_v28 = vpop.f32.mrb[0].mxu0 }
  0xdf   :  { %v875_v29 = vpop.f32.mrb[1].mxu0 }
  0xf8   :  { %v747_v30 = vpop.f32.mrb[0].mxu1 }
  0xf9   :  { %v748_v31 = vpop.f32.mrb[1].mxu1 }
  0xfa   :  { %v749_v32 = vadd.f32 %v748_v31, %v747_v30 }
  0xfc   :  { %v315_v33 = vadd.f32 %v749_v32, %v244_v28 }
  0xfe   :  { %v782_v34 = vpop.f32.mrb[2].mxu0 }
  0xff   :  { %v783_v35 = vpop.f32.mrb[3].mxu0 }
 0x100   :  { %v784_v36 = vadd.f32 %v783_v35, %v782_v34 }
 0x102   :  { %v385_v37 = vadd.f32 %v784_v36, %v315_v33 }
 0x118   :  { %v817_v38 = vpop.f32.mrb[2].mxu1 }
 0x119   :  { %v818_v39 = vpop.f32.mrb[3].mxu1 }
 0x11a   :  { %v819_v40 = vadd.f32 %v818_v39, %v817_v38 }
 0x11c   :  { %v455_v41 = vadd.f32 %v819_v40, %v385_v37 }
 0x11e   :  { %v852_v42 = vpop.f32.mrb[4].mxu0 }
 0x11f   :  { %v853_v43 = vpop.f32.mrb[5].mxu0 }
 0x120   :  { %v854_v44 = vadd.f32 %v853_v43, %v852_v42 }
 0x122   :  { %v525_v45 = vadd.f32 %v854_v44, %v455_v41 }
 0x124   :  { %885 = vmatmul.mubr.msk.f32.vlgmr.msra.gmra.mrb[4].mxu1 %vm174_vm1, %v525_v45 }
 0x1f7   :  { %v608_v53 = vpop.f32.mrb[4].mxu1 }
 0x1f8   :  { %v609_v54 = vadd.f32 %v706_v52, %v608_v53  ;;  %v886_v55 = vpop.f32.mrb[5].mxu1 }
 0x1fa   :  { %v612_v56 = vmax.f32 %v609_v54, 0.0 }
 0x1fc   :  { %613 = vst.msk [vmem:[#allocation2] sm:$0xff] %vm174_vm1, %v612_v56 }
 0x203   :  { %v614_v57 = vld [vmem:[#allocation2] sm:$0xff] }
 0x204   :  { %896 = vmatmul.mubr.msk.f32.vlgmr.msra.gmra.mrb[6].mxu0 %vm174_vm1, %v614_v57 }
 0x2d7   :  { %v696_v59 = vpop.f32.mrb[6].mxu0 }
 0x2d8   :  { %v697_v0 = vadd.f32 %v708_v58, %v696_v59  ;;  %v897_v60 = vpop.f32.mrb[7].mxu0 }
 0x2da   :  { %700 = vst [vmem:[%s1575_s8] sm:$0xff] %v697_v0 }

</bundles_post_ra>
